<compile_context>
chip_gen: v7x
topology: tpu7x:2x2x1
jax: 0.10.0
libtpu: 0.0.40
codegen_flags: <defaults>
</compile_context>

<pallas_src>
import functools

import jax
import jax.numpy as jnp
from jax.experimental import pallas as pl
from jax.experimental.pallas import tpu as pltpu


def _round_up(x, m):
    return ((x + m - 1) // m) * m


def _mdice_kernel(x_ref, t_ref, o_ref, inter_acc, sum_acc, *,
                  s_total, sub_tile, mask_ragged):
    # x_ref, t_ref : VMEM (sub_tile, 128)  one (n, c) spatial chunk, native dtype
    # o_ref        : VMEM (1, 128)         per-(n, c) dice, broadcast over lanes
    # inter_acc    : VMEM (1, 128) f32     partial sum of x*t (lane axis kept)
    # sum_acc      : VMEM (1, 128) f32     partial sum of x plus partial sum of t
    h = pl.program_id(2)
    nh = pl.num_programs(2)

    @pl.when(h == 0)
    def _():
        inter_acc[...] = jnp.zeros_like(inter_acc)
        sum_acc[...] = jnp.zeros_like(sum_acc)

    x = x_ref[...].astype(jnp.float32)
    t = t_ref[...].astype(jnp.float32)

    if mask_ragged:
        # The last h block can stick out past S; its out-of-bounds sublanes hold
        # unspecified data, so select them to zero (select, not multiply —
        # garbage could be NaN/Inf).
        valid = s_total - h * sub_tile
        rows = jax.lax.broadcasted_iota(jnp.int32, x.shape, 0)
        keep = rows < valid
        x = jnp.where(keep, x, 0.0)
        t = jnp.where(keep, t, 0.0)

    inter_acc[...] += jnp.sum(x * t, axis=0, keepdims=True)
    sum_acc[...] += jnp.sum(x, axis=0, keepdims=True) + jnp.sum(t, axis=0, keepdims=True)

    @pl.when(h == nh - 1)
    def _():
        smooth = jnp.float32(1.0)
        inter = jnp.sum(inter_acc[...], axis=1, keepdims=True)   # (1, 1)
        denom = jnp.sum(sum_acc[...], axis=1, keepdims=True)     # (1, 1)
        dice = 2.0 * (inter + smooth) / (denom + smooth)         # (1, 1)
        o_ref[...] = jnp.broadcast_to(dice, o_ref.shape)


def _default_vmem_limit_bytes():
    # Generation-aware: ~48 MiB on v7x (64 MiB physical per TC), up to 96 MiB
    # on v5e/v6e (128 MiB physical).  Falls back to a safe 48 MiB.
    try:
        cap = int(pltpu.get_tpu_info().vmem_capacity_bytes)
    except Exception:
        cap = 64 * 1024 * 1024
    return max(32 * 1024 * 1024, min(cap - 16 * 1024 * 1024, 96 * 1024 * 1024))


def multiclass_dice_loss(inp, target, weights=None, *, tile_bytes=6 * 1024 * 1024):
    """Matches MulticlassDiceLoss.forward(input, target, weights).

    inp, target : (N, C, H, W) NCHW.  Streamed in their native dtype (bf16 /
                  int8 OK) and upcast to f32 per tile inside the kernel.
    weights     : optional (C,).
    tile_bytes  : per-block budget in f32-equivalent bytes (so the in-kernel
                  f32 temporaries are accounted for regardless of input dtype).
    Returns a scalar float32.
    """
    assert inp.shape == target.shape and inp.ndim == 4
    N, C, H, W = inp.shape
    HW = H * W

    # Only bool is promoted in the wrapper; everything else streams narrow.
    if inp.dtype == jnp.bool_:
        inp = inp.astype(jnp.float32)
    if target.dtype == jnp.bool_:
        target = target.astype(jnp.float32)

    x = inp.reshape(N, C, HW)
    t = target.reshape(N, C, HW)

    # Lane-dense layout needs HW % 128 == 0.  Pad only to the next multiple of
    # 128 (zeros are exact for these plain sums); the common aligned case is a
    # free reshape with no extra HBM traffic.
    HWp = _round_up(HW, 128)
    if HWp != HW:
        pad = ((0, 0), (0, 0), (0, HWp - HW))
        x = jnp.pad(x, pad)
        t = jnp.pad(t, pad)
    S = HWp // 128
    x = x.reshape(N, C, S, 128)
    t = t.reshape(N, C, S, 128)

    # Tile sizing independent of N: per-(n, c) blocks keep every DMA one large
    # contiguous chunk.
    sub_budget = max(8, (tile_bytes // (128 * 4)) // 8 * 8)
    if S <= sub_budget:
        sub_tile = S              # full spatial extent in one step (always legal)
        num_h = 1
    else:
        sub_tile = sub_budget     # multiple of 8; ragged last block masked in-kernel
        num_h = pl.cdiv(S, sub_tile)
    mask_ragged = (num_h * sub_tile) != S

    kernel = functools.partial(
        _mdice_kernel, s_total=S, sub_tile=sub_tile, mask_ragged=mask_ragged)

    dice = pl.pallas_call(
        kernel,
        out_shape=jax.ShapeDtypeStruct((N, C, 1, 128), jnp.float32),
        grid=(N, C, num_h),
        in_specs=[
            pl.BlockSpec((None, None, sub_tile, 128), lambda n, c, h: (n, c, h, 0)),
            pl.BlockSpec((None, None, sub_tile, 128), lambda n, c, h: (n, c, h, 0)),
        ],
        out_specs=pl.BlockSpec((None, None, 1, 128), lambda n, c, h: (n, c, 0, 0)),
        scratch_shapes=[
            pltpu.VMEM((1, 128), jnp.float32),
            pltpu.VMEM((1, 128), jnp.float32),
        ],
        compiler_params=pltpu.CompilerParams(
            dimension_semantics=("parallel", "parallel", "arbitrary"),
            vmem_limit_bytes=_default_vmem_limit_bytes(),
        ),
    )(x, t)

    # Tiny epilogue on (N, C): loss = sum_c w[c] * (1 - (1/N) * sum_n dice_{n,c})
    dice_nc = dice[:, :, 0, 0]                                    # (N, C)
    per_class = 1.0 - jnp.sum(dice_nc, axis=0) / jnp.float32(N)   # (C,)
    if weights is not None:
        per_class = per_class * jnp.asarray(weights, dtype=jnp.float32)
    return jnp.sum(per_class)


def _reference(inp, target, weights=None):
    # pure-JAX reference mirroring the PyTorch module
    N, C = target.shape[0], target.shape[1]
    total = jnp.float32(0.0)
    for i in range(C):
        xf = inp[:, i].reshape(N, -1).astype(jnp.float32)
        tf = target[:, i].reshape(N, -1).astype(jnp.float32)
        inter = (xf * tf).sum(1)
        loss = 2.0 * (inter + 1.0) / (xf.sum(1) + tf.sum(1) + 1.0)
        loss = 1.0 - loss.sum() / N
        if weights is not None:
            loss = loss * weights[i]
        total = total + loss
    return total


if __name__ == "__main__":
    key = jax.random.PRNGKey(0)
    k1, k2, k3, k4 = jax.random.split(key, 4)

    # probabilistic "input" (softmax-like) and one-hot "target" in NCHW
    N, C, H, W = 2, 4, 16, 16
    x = jax.nn.softmax(jax.random.normal(k1, (N, C, H, W), dtype=jnp.float32), axis=1)
    labels = jax.random.randint(k2, (N, H, W), 0, C)
    tgt = jax.nn.one_hot(labels, C, dtype=jnp.float32).transpose(0, 3, 1, 2)

    loss = jax.block_until_ready(multiclass_dice_loss(x, tgt))
    ref = _reference(x, tgt)
    assert jnp.allclose(loss, ref, rtol=1e-5, atol=1e-5), (loss, ref)

    # weighted path
    w = jnp.array([0.5, 1.0, 2.0, 0.25], dtype=jnp.float32)
    loss_w = jax.block_until_ready(multiclass_dice_loss(x, tgt, w))
    ref_w = _reference(x, tgt, w)
    assert jnp.allclose(loss_w, ref_w, rtol=1e-5, atol=1e-5), (loss_w, ref_w)

    # exercise the multi-tile accumulation + ragged-last-tile mask path with a
    # deliberately tiny tile budget (H*W = 2304 -> S = 18, sub_tile = 8, num_h = 3)
    N2, C2, H2, W2 = 2, 3, 48, 48
    x2 = jax.nn.softmax(jax.random.normal(k3, (N2, C2, H2, W2), dtype=jnp.float32), axis=1)
    l2 = jax.random.randint(k4, (N2, H2, W2), 0, C2)
    t2 = jax.nn.one_hot(l2, C2, dtype=jnp.float32).transpose(0, 3, 1, 2)
    loss2 = jax.block_until_ready(multiclass_dice_loss(x2, t2, tile_bytes=4096))
    ref2 = _reference(x2, t2)
    assert jnp.allclose(loss2, ref2, rtol=1e-5, atol=1e-5), (loss2, ref2)

    print("KERNEL_OK")
</pallas_src>

<mosaic_0001>
module attributes {stable_mosaic.version = 11 : i64} {
  func.func @_mdice_kernel(%arg0: i32, %arg1: i32, %arg2: i32, %arg3: memref<1x1x2x128xf32, #tpu.memory_space<vmem>>, %arg4: memref<1x1x2x128xf32, #tpu.memory_space<vmem>>, %arg5: memref<1x1x1x128xf32, #tpu.memory_space<vmem>>, %arg6: memref<1x128xf32, #tpu.memory_space<vmem>>, %arg7: memref<1x128xf32, #tpu.memory_space<vmem>>) attributes {dimension_semantics = [#tpu.dimension_semantics<parallel>, #tpu.dimension_semantics<parallel>, #tpu.dimension_semantics<arbitrary>], iteration_bounds = array<i64: 2, 4, 1>, scalar_prefetch = 0 : i64, scratch_operands = 2 : i64, tpu.core_type = #tpu.core_type<tc>, window_params = [{transform_indices = @transform_0, window_bounds = array<i64: 1, 1, 2, 128>}, {transform_indices = @transform_1, window_bounds = array<i64: 1, 1, 2, 128>}, {transform_indices = @transform_2, window_bounds = array<i64: 1, 1, 1, 128>}]} {
    %c0_i32 = arith.constant 0 : i32
    %0 = arith.cmpi eq, %arg2, %c0_i32 : i32
    %1 = arith.extui %0 : i1 to i32
    %c0_i32_0 = arith.constant 0 : i32
    %2 = arith.cmpi ne, %1, %c0_i32_0 : i32
    scf.if %2 {
      %cst_20 = arith.constant 0.000000e+00 : f32
      %24 = vector.broadcast %cst_20 : f32 to vector<1x128xf32>
      %c0_21 = arith.constant 0 : index
      %c0_22 = arith.constant 0 : index
      %25 = vector.load %arg6[%c0_21, %c0_22] : memref<1x128xf32, #tpu.memory_space<vmem>>, vector<1x128xf32>
      tpu.vector_store %arg6[%c0_21, %c0_22], %24 {strides = array<i32>} : memref<1x128xf32, #tpu.memory_space<vmem>>, vector<1x128xf32>,
      %cst_23 = arith.constant 0.000000e+00 : f32
      %26 = vector.broadcast %cst_23 : f32 to vector<1x128xf32>
      %c0_24 = arith.constant 0 : index
      %c0_25 = arith.constant 0 : index
      %27 = vector.load %arg7[%c0_24, %c0_25] : memref<1x128xf32, #tpu.memory_space<vmem>>, vector<1x128xf32>
      tpu.vector_store %arg7[%c0_24, %c0_25], %26 {strides = array<i32>} : memref<1x128xf32, #tpu.memory_space<vmem>>, vector<1x128xf32>,
    } else {
    }
    %c0 = arith.constant 0 : index
    %c0_1 = arith.constant 0 : index
    %c0_2 = arith.constant 0 : index
    %c0_3 = arith.constant 0 : index
    %3 = vector.load %arg3[%c0, %c0_1, %c0_2, %c0_3] : memref<1x1x2x128xf32, #tpu.memory_space<vmem>>, vector<1x1x2x128xf32>
    %4 = vector.shape_cast %3 : vector<1x1x2x128xf32> to vector<2x128xf32>
    %c0_4 = arith.constant 0 : index
    %c0_5 = arith.constant 0 : index
    %c0_6 = arith.constant 0 : index
    %c0_7 = arith.constant 0 : index
    %5 = vector.load %arg4[%c0_4, %c0_5, %c0_6, %c0_7] : memref<1x1x2x128xf32, #tpu.memory_space<vmem>>, vector<1x1x2x128xf32>
    %6 = vector.shape_cast %5 : vector<1x1x2x128xf32> to vector<2x128xf32>
    %c0_8 = arith.constant 0 : index
    %c0_9 = arith.constant 0 : index
    %7 = vector.load %arg6[%c0_8, %c0_9] : memref<1x128xf32, #tpu.memory_space<vmem>>, vector<1x128xf32>
    %8 = arith.mulf %4, %6 : vector<2x128xf32>
    %cst = arith.constant dense<0.000000e+00> : vector<128xf32>
    %9 = vector.multi_reduction <add>, %8, %cst [0] : vector<2x128xf32> to vector<128xf32>
    %10 = vector.shape_cast %9 : vector<128xf32> to vector<1x128xf32>
    %11 = arith.addf %7, %10 : vector<1x128xf32>
    %c0_10 = arith.constant 0 : index
    %c0_11 = arith.constant 0 : index
    %12 = vector.load %arg6[%c0_10, %c0_11] : memref<1x128xf32, #tpu.memory_space<vmem>>, vector<1x128xf32>
    tpu.vector_store %arg6[%c0_10, %c0_11], %11 {strides = array<i32>} : memref<1x128xf32, #tpu.memory_space<vmem>>, vector<1x128xf32>,
    %c0_12 = arith.constant 0 : index
    %c0_13 = arith.constant 0 : index
    %13 = vector.load %arg7[%c0_12, %c0_13] : memref<1x128xf32, #tpu.memory_space<vmem>>, vector<1x128xf32>
    %cst_14 = arith.constant dense<0.000000e+00> : vector<128xf32>
    %14 = vector.multi_reduction <add>, %4, %cst_14 [0] : vector<2x128xf32> to vector<128xf32>
    %15 = vector.shape_cast %14 : vector<128xf32> to vector<1x128xf32>
    %cst_15 = arith.constant dense<0.000000e+00> : vector<128xf32>
    %16 = vector.multi_reduction <add>, %6, %cst_15 [0] : vector<2x128xf32> to vector<128xf32>
    %17 = vector.shape_cast %16 : vector<128xf32> to vector<1x128xf32>
    %18 = arith.addf %15, %17 : vector<1x128xf32>
    %19 = arith.addf %13, %18 : vector<1x128xf32>
    %c0_16 = arith.constant 0 : index
    %c0_17 = arith.constant 0 : index
    %20 = vector.load %arg7[%c0_16, %c0_17] : memref<1x128xf32, #tpu.memory_space<vmem>>, vector<1x128xf32>
    tpu.vector_store %arg7[%c0_16, %c0_17], %19 {strides = array<i32>} : memref<1x128xf32, #tpu.memory_space<vmem>>, vector<1x128xf32>,
    %c0_i32_18 = arith.constant 0 : i32
    %21 = arith.cmpi eq, %arg2, %c0_i32_18 : i32
    %22 = arith.extui %21 : i1 to i32
    %c0_i32_19 = arith.constant 0 : i32
    %23 = arith.cmpi ne, %22, %c0_i32_19 : i32
    scf.if %23 {
      %c0_20 = arith.constant 0 : index
      %c0_21 = arith.constant 0 : index
      %24 = vector.load %arg6[%c0_20, %c0_21] : memref<1x128xf32, #tpu.memory_space<vmem>>, vector<1x128xf32>
      %cst_22 = arith.constant dense<0.000000e+00> : vector<1xf32>
      %25 = vector.multi_reduction <add>, %24, %cst_22 [1] : vector<1x128xf32> to vector<1xf32>
      %26 = vector.shape_cast %25 : vector<1xf32> to vector<1x1xf32>
      %c0_23 = arith.constant 0 : index
      %c0_24 = arith.constant 0 : index
      %27 = vector.load %arg7[%c0_23, %c0_24] : memref<1x128xf32, #tpu.memory_space<vmem>>, vector<1x128xf32>
      %cst_25 = arith.constant dense<0.000000e+00> : vector<1xf32>
      %28 = vector.multi_reduction <add>, %27, %cst_25 [1] : vector<1x128xf32> to vector<1xf32>
      %29 = vector.shape_cast %28 : vector<1xf32> to vector<1x1xf32>
      %cst_26 = arith.constant 1.000000e+00 : f32
      %30 = vector.broadcast %cst_26 : f32 to vector<1x1xf32>
      %31 = arith.addf %26, %30 : vector<1x1xf32>
      %cst_27 = arith.constant 2.000000e+00 : f32
      %32 = vector.broadcast %cst_27 : f32 to vector<1x1xf32>
      %33 = arith.mulf %32, %31 : vector<1x1xf32>
      %cst_28 = arith.constant 1.000000e+00 : f32
      %34 = vector.broadcast %cst_28 : f32 to vector<1x1xf32>
      %35 = arith.addf %29, %34 : vector<1x1xf32>
      %36 = arith.divf %33, %35 : vector<1x1xf32>
      %37 = vector.shape_cast %36 : vector<1x1xf32> to vector<1x1xf32>
      %38 = vector.broadcast %37 : vector<1x1xf32> to vector<1x128xf32>
      %c0_29 = arith.constant 0 : index
      %c0_30 = arith.constant 0 : index
      %c0_31 = arith.constant 0 : index
      %c0_32 = arith.constant 0 : index
      %39 = vector.load %arg5[%c0_29, %c0_30, %c0_31, %c0_32] : memref<1x1x1x128xf32, #tpu.memory_space<vmem>>, vector<1x1x1x128xf32>
      %40 = vector.shape_cast %39 : vector<1x1x1x128xf32> to vector<1x128xf32>
      %41 = vector.shape_cast %38 : vector<1x128xf32> to vector<1x1x1x128xf32>
      tpu.vector_store %arg5[%c0_29, %c0_30, %c0_31, %c0_32], %41 {strides = array<i32>} : memref<1x1x1x128xf32, #tpu.memory_space<vmem>>, vector<1x1x1x128xf32>,
    } else {
    }
    return
  }
  func.func @transform_0(%arg0: i32, %arg1: i32, %arg2: i32) -> (i32, i32, i32, i32) {
    %c0_i32 = arith.constant 0 : i32
    %c0_i32_0 = arith.constant 0 : i32
    return %arg0, %arg1, %arg2, %c0_i32 : i32, i32, i32, i32
  }
  func.func @transform_1(%arg0: i32, %arg1: i32, %arg2: i32) -> (i32, i32, i32, i32) {
    %c0_i32 = arith.constant 0 : i32
    %c0_i32_0 = arith.constant 0 : i32
    return %arg0, %arg1, %arg2, %c0_i32 : i32, i32, i32, i32
  }
  func.func @transform_2(%arg0: i32, %arg1: i32, %arg2: i32) -> (i32, i32, i32, i32) {
    %c0_i32 = arith.constant 0 : i32
    %c0_i32_0 = arith.constant 0 : i32
    %c0_i32_1 = arith.constant 0 : i32
    return %arg0, %arg1, %c0_i32, %c0_i32_0 : i32, i32, i32, i32
  }
}

</mosaic_0001>

<bundles_post_ra>
// kernel: tpu_custom_call.1
= control target key start
LH: loop header
LB: loop body
LE: loop exit
PB: predicated region body
PF: predicated region fallthrough
CT: control target
= control target key end

     0   :  { %7 = vsyncpa [#allocation5], 0  ;;  %s944_s0 = inlined_call_operand.hbm [shape: f32[2,4,2,128], index: 0, kind: input, shape index: {}]   ;;  %s945_s1 = inlined_call_operand.hbm [shape: f32[2,4,2,128], index: 1, kind: input, shape index: {}]   ;;  %s946_s2 = inlined_call_operand.hbm [shape: f32[2,4,1,128], index: 2, kind: output, shape index: {}]  }
   0x1   :  { %9 = vsyncpa [#allocation5 + $0x1], 0 }
   0x2   :  { %10 = vsyncpa [#allocation8], 0 }
   0x3   :  { %12 = vsyncpa [#allocation8 + $0x1], 0 }
   0x4   :  { %13 = vsyncpa [#allocation6], 0 }
   0x5   :  { %15 = vsyncpa [#allocation6 + $0x1], 0  ;;  %s698_s9 = smov 0   ;;  %s700_s10 = smov 0  }
   0x6   :  { %s702_s11 = smov 0   ;;  %s704_s12 = smov 0  }
   0x7   :  { %s706_s13 = smov 0   ;;  %s708_s14 = smov 0  }
   0x8   :  { %s710_s15 = smov 0   ;;  %s712_s16 = smov 0  }
   0x9 LB: > { %s412_s17 = sadd.s32 4294967295, %s677_s16   ;;  %s413_s18 = sadd.s32 4294967294, %s677_s16   ;;  %s677_s16 = sphi %s712_s16, %s21_s16   ;;  %s673_s15 = sphi %s710_s15, %s969_s15   ;;  %s669_s14 = sphi %s708_s14, %s968_s14   ;;  %s665_s13 = sphi %s706_s13, %s967_s13   ;;  %s661_s12 = sphi %s704_s12, %s966_s12   ;;  %s657_s11 = sphi %s702_s11, %s965_s11   ;;  %s653_s10 = sphi %s700_s10, %s964_s10   ;;  %s649_s9 = sphi %s698_s9, %s963_s9  }
   0xa   : > { %s36_s19 = sadd.s32 1, %s669_s14  ;;  %s40_s20 = sadd.s32 1, %s673_s15 }
   0xb   : > { %p38_p0 = scmp.ge.s32.totalorder %s36_s19, 4  ;;  %s51_s21 = sadd.s32 1, %s657_s11 }
   0xc   : > { %p58_p1 = scmp.ne.s32.totalorder %s657_s11, %s653_s10  ;;  %p59_p2 = scmp.eq.s32.totalorder %s677_s16, 0 }
   0xd   : > { %s971_s19 = smov (%p38_p0, %s36_s19), 0  ;;  %s973_s20 = smov (!%p38_p0, %s40_s20), %s673_s15 }
   0xe   : > { %s45_s22 = ssub.s32 %s669_s14, %s971_s19  ;;  %p751_p3 = por %p59_p2, %p58_p1 }
   0xf   : > { %p42_p4 = scmp.ge.s32.totalorder %s973_s20, 2  ;;  %p64_p5 = scmp.ne.s32.totalorder %s653_s10, %s649_s9 }
  0x10   : > { %p65_p6 = scmp.eq.s32.totalorder %s412_s17, 0  ;;  %p120_p7 = scmp.eq.s32.totalorder %s412_s17, 7 }
  0x11   : > { %s975_s20 = smov (%p42_p4, %s973_s20), 0  ;;  %p126_p10 = scmp.eq.s32.totalorder %s413_s18, 7 }
  0x12   : > { %p759_p8 = por %p65_p6, %p64_p5  ;;  %p763_p9 = por %p120_p7, %p58_p1 }
  0x13   : > { %s44_s26 = ssub.s32 %s673_s15, %s975_s20  ;;  %p769_p12 = por %p126_p10, %p64_p5 }
  0x14   : > { %s951_s24 = scalar_select %p759_p8, 1, 0 }
  0x15   : > { %s952_s25 = scalar_select %p763_p9, 1, 0 }
  0x16   : > { %s46_s27 = sor.u32 %s45_s22, %s44_s26  ;;  %p446_p13 = scmp.lt.s32.totalorder %s677_s16, 8 }
  0x17   : > { %p49_p11 = scmp.eq.s32.totalorder %s46_s27, 0  ;;  %s775_s29 = sand.u32 1, %s657_s11  }
  0x18   : > { %s953_s28 = scalar_select %p769_p12, 1, 0 }
  0x19   : > { %s778_s30 = scalar_select %p49_p11, %s657_s11, %s51_s21  }
  0x1a   : > { %s947_s3 = sshll.u32 %s775_s29, 1  ;;  %s417_s4 = sshll.u32 %s673_s15, 2 }
  0x1b   : > { %s783_s5 = sadd.s32 %s669_s14, %s417_s4  ;;  %s150_s6 = scalar_lea.vmem [#allocation4], %s947_s3 }
  0x1c   : > { %s160_s7 = sshll.u32 %s150_s6, 4  ;;  %s418_s8 = sshll.u32 %s783_s5, 5  ;;  %s788_s7 = int_to_ptr.vmem [resolvable:$true] %s160_s7 }
  0x1d   : > { %s795_s22 = scalar_lea.hbm %s944_s0, %s418_s8  ;;  %p799_p0 = pnand %p446_p13, %p751_p3 }
  0x1e   : > { %s147_s26 = scalar_lea.sflag [#allocation5], %s775_s29  ;;  %s515_s27 = scalar_lea.hbm %s795_s22, 32 }
  0x1f   : > { %p516_p4 = scmp.ne.s32.totalorder %s795_s22, %s515_s27  ;;  %p517_p5 = pneg %p799_p0 }
  0x20   : > { %s520_s6 = scalar_lea.hbm %s944_s0, 256  ;;  %p521_p3 = scmp.lt.u32.totalorder %s795_s22, %s944_s0 }
  0x21   : > { %p518_p6 = pnand %p517_p5, %p516_p4  ;;  %p522_p10 = scmp.lt.u32.totalorder %s520_s6, %s515_s27 }
  0x22   : > { %p524_p13 = scmp.lt.u32.totalorder %s515_s27, %s795_s22 }
  0x23   : > { %p519_p7 = pneg %p518_p6  ;;  %p523_p11 = por %p522_p10, %p521_p3 }
  0x25   : > { %p525_p1 = por %p524_p13, %p523_p11 }
  0x27   : > { %p526_p2 = pnand %p525_p1, %p519_p7 }
  0x29   : > { %529 = shalt.err (!%p526_p2)
}
  0x2a   : > { %s530_s3 = scalar_lea.vmem %s788_s7, 32  ;;  %s679_s23 = smov [#allocation4]  }
  0x2b   : > { %p531_p4 = scmp.ne.s32.totalorder %s788_s7, %s530_s3  ;;  %s535_s4 = sshll.u32 %s679_s23, 4  ;;  %s536_s4 = int_to_ptr.vmem [resolvable:$false] %s535_s4 }
  0x2c   : > { %s537_s17 = scalar_lea.vmem %s536_s4, 64  ;;  %p538_p9 = scmp.lt.s32.totalorder %s788_s7, %s536_s4 }
  0x2d   : > { %p533_p6 = pnand %p531_p4, %p517_p5  ;;  %p539_p3 = scmp.lt.s32.totalorder %s537_s17, %s530_s3 }
  0x2f   : > { %p534_p12 = pneg %p533_p6  ;;  %p540_p10 = por %p539_p3, %p538_p9 }
  0x31   : > { %p541_p11 = pnand %p540_p10, %p534_p12 }
  0x33   : > { %544 = shalt.err (!%p541_p11)
}
  0x34   : > { %438 = dma.hbm_to_vmem [thread:$0]  (!%p799_p0), %s795_s22, 32, %s788_s7, %s147_s26  }
  0x35   : > { %p955_p1 = scmp.lt.s32.totalorder %s677_s16, 9  ;;  %p956_p2 = scmp.ge.s32.totalorder %s677_s16, 1 }
  0x36   : > { %s844_s18 = scalar_lea.hbm %s945_s1, %s418_s8  ;;  %s958_s23 = sshll.u32 %s775_s29, 1 }
  0x37   : > { %p835_p7 = pnand %p956_p2, %p955_p1  ;;  %s171_s4 = scalar_lea.vmem [#allocation7], %s958_s23 }
  0x38   : > { %s181_s17 = sshll.u32 %s171_s4, 4  ;;  %s168_s7 = scalar_lea.sflag [#allocation8], %s775_s29  ;;  %s182_s17 = int_to_ptr.vmem [resolvable:$true] %s181_s17 }
  0x39   : > { %s957_s27 = scalar_select %p835_p7, 1, 0 }
  0x3a   : > { %s545_s22 = scalar_lea.hbm %s844_s18, 32  ;;  %s550_s8 = scalar_lea.hbm %s945_s1, 256 }
  0x3b   : > { %p546_p9 = scmp.ne.s32.totalorder %s844_s18, %s545_s22  ;;  %p551_p4 = scmp.lt.u32.totalorder %s844_s18, %s945_s1 }
  0x3c   : > { %p552_p6 = scmp.lt.u32.totalorder %s550_s8, %s545_s22  ;;  %p554_p10 = scmp.lt.u32.totalorder %s545_s22, %s844_s18 }
  0x3d   : > { %p548_p12 = pnand %p546_p9, %p517_p5 }
  0x3e   : > { %p553_p3 = por %p552_p6, %p551_p4 }
  0x3f   : > { %p549_p13 = pneg %p548_p12 }
  0x40   : > { %p555_p11 = por %p554_p10, %p553_p3 }
  0x42   : > { %p556_p1 = pnand %p555_p11, %p549_p13 }
  0x44   : > { %559 = shalt.err (!%p556_p1)
}
  0x45   : > { %s560_s29 = scalar_lea.vmem %s182_s17, 32  ;;  %s680_s23 = smov [#allocation7]  }
  0x46   : > { %p561_p2 = scmp.ne.s32.totalorder %s182_s17, %s560_s29  ;;  %s565_s4 = sshll.u32 %s680_s23, 4  ;;  %s566_s4 = int_to_ptr.vmem [resolvable:$false] %s565_s4 }
  0x47   : > { %s567_s5 = scalar_lea.vmem %s566_s4, 64  ;;  %p568_p8 = scmp.lt.s32.totalorder %s182_s17, %s566_s4 }
  0x48   : > { %p563_p9 = pnand %p561_p2, %p517_p5  ;;  %p569_p7 = scmp.lt.s32.totalorder %s567_s5, %s560_s29 }
  0x4a   : > { %p564_p12 = pneg %p563_p9  ;;  %p570_p4 = por %p569_p7, %p568_p8 }
  0x4c   : > { %p571_p6 = pnand %p570_p4, %p564_p12 }
  0x4e   : > { %574 = shalt.err (!%p571_p6)
}
  0x4f   : > { %441 = dma.hbm_to_vmem [thread:$0]  (!%p799_p0), %s844_s18, 32, %s182_s17, %s168_s7  }
  0x50   : > { %p959_p13 = scmp.ne.s32.totalorder %s957_s27, 0 }
  0x51   : > { %s871_s22 = sand.u32 (!%p959_p13), 1, %s653_s10   ;;  %p960_p5 = scmp.ne.s32.totalorder (!%p959_p13), %s951_s24, 0 }
  0x52   : > { %190 = sbr.rel (%p959_p13) target bundleno = 291 (0x123), region = 28  ;;  %s423_s26 = sshll.u32 (!%p959_p13), %s871_s22, 1 }
  0x53   : > { %s193_s8 = scalar_lea.sflag (!%p959_p13), [#allocation5], %s871_s22  ;;  %s196_s3 = scalar_lea.vmem (!%p959_p13), [#allocation4], %s423_s26 }
  0x59   : > { %636 = dma.done.wait (%p960_p5), %s193_s8, 32  }
  0x5a   : > { %638 = vsyncadd (%p960_p5), %s193_s8, 4294967264  ;;  %s202_s21 = scalar_lea.sflag [#allocation8], %s871_s22  ;;  %s205_s18 = scalar_lea.vmem [#allocation7], %s423_s26 }
  0x5b   : > { %640 = dma.done.wait (%p960_p5), %s202_s21, 32  }
  0x5c   : > { %642 = vsyncadd (%p960_p5), %s202_s21, 4294967264  ;;  %v681_v0 = vmov 0.0   ;;  %vm240_vm0 = vcmask 1041408   ;;  %v236_v1 = vld [vmem:[%s196_s3] sm:$0x3]  ;;  %vm272_vm1 = vcmask 1040384  }
  0x5d   : > { %234 = vst [vmem:[#allocation2] sm:$0x1] %v681_v0  ;;  %235 = vst [vmem:[#allocation3] sm:$0x1] %v681_v0  ;;  %v237_v2 = vld [vmem:[%s205_s18] sm:$0x3] }
  0x5e   : > { %v251_v3 = vsel %vm240_vm0, %v236_v1, 0.0  ;;  %v258_v4 = vsel %vm240_vm0, %v237_v2, 0.0  ;;  %v239_v5 = vmul.f32 %v237_v2, %v236_v1  ;;  %s425_s24 = sshll.u32 %s665_s13, 2  ;;  %s229_s7 = scalar_lea.vmem [#allocation9], %s871_s22 }
  0x5f   : > { %v252_v6 = vrot.slane %v251_v3, 4  ;;  %v259_v7 = vrot.slane %v258_v4, 4  ;;  %s297_s27 = sadd.s32 %s661_s12, %s425_s24  ;;  %s301_s6 = sshll.u32 %s229_s7, 4  ;;  %s892_s6 = int_to_ptr.vmem [resolvable:$true] %s301_s6 }
  0x60   : > { %v241_v8 = vsel %vm240_vm0, %v239_v5, 0.0  ;;  %s426_s17 = sshll.u32 %s297_s27, 4  ;;  %s287_s13 = scalar_lea.sflag [#allocation6], %s871_s22 }
  0x61   : > { %v253_v9 = vadd.f32 %v252_v6, %v251_v3  ;;  %v260_v10 = vadd.f32 %v259_v7, %v258_v4  ;;  %v242_v11 = vrot.slane %v241_v8, 4  ;;  %s890_s4 = scalar_lea.hbm %s946_s2, %s426_s17  ;;  %s575_s5 = scalar_lea.vmem %s892_s6, 16 }
  0x62   : > { %p576_p8 = scmp.ne.s32.totalorder %s892_s6, %s575_s5  ;;  %p961_p0 = scmp.ne.s32.totalorder %s952_s25, 0 }
  0x63   : > { %v254_v12 = vrot.slane %v253_v9, 2  ;;  %v261_v13 = vrot.slane %v260_v10, 2  ;;  %v243_v14 = vadd.f32 %v242_v11, %v241_v8  ;;  %s682_s12 = smov [#allocation9]  }
  0x64   : > { %v250_v24 = vld [vmem:[#allocation3] sm:$0x1]  ;;  %v238_v25 = vld [vmem:[#allocation2] sm:$0x1]  ;;  %p577_p7 = pnand %p576_p8, %p961_p0  ;;  %s579_s26 = sshll.u32 %s682_s12, 4  ;;  %s580_s26 = int_to_ptr.vmem [resolvable:$false] %s579_s26 }
  0x65   : > { %v255_v15 = vadd.f32 %v254_v12, %v253_v9  ;;  %v262_v16 = vadd.f32 %v261_v13, %v260_v10  ;;  %v244_v17 = vrot.slane %v243_v14, 2  ;;  %s581_s8 = scalar_lea.vmem %s580_s26, 32  ;;  %p582_p10 = scmp.lt.s32.totalorder %s892_s6, %s580_s26 }
  0x66   : > { %p578_p3 = pneg %p577_p7  ;;  %p583_p11 = scmp.lt.s32.totalorder %s581_s8, %s575_s5 }
  0x67   : > { %v256_v18 = vrot.slane %v255_v15, 1  ;;  %v263_v19 = vrot.slane %v262_v16, 1  ;;  %v245_v20 = vadd.f32 %v244_v17, %v243_v14 }
  0x68   : > { %p584_p1 = por %p583_p11, %p582_p10 }
  0x69   : > { %v257_v21 = vadd.f32 %v256_v18, %v255_v15  ;;  %v264_v22 = vadd.f32 %v263_v19, %v262_v16  ;;  %v246_v23 = vrot.slane %v245_v20, 1 }
  0x6a   : > { %p585_p2 = pnand %p584_p1, %p578_p3 }
  0x6b   : > { %v265_v26 = vadd.f32 %v264_v22, %v257_v21  ;;  %v247_v27 = vadd.f32 %v246_v23, %v245_v20 }
  0x6d   : > { %v266_v28 = vadd.f32 %v265_v26, %v250_v24  ;;  %v248_v29 = vadd.f32 %v247_v27, %v238_v25 }
  0x6f   : > { %267 = vst [vmem:[#allocation3] sm:$0x1] %v266_v28  ;;  %249 = vst [vmem:[#allocation2] sm:$0x1] %v248_v29 }
  0x76   : > { %v276_v30 = vld [vmem:[#allocation3] sm:$0x1]  ;;  %v271_v31 = vld [vmem:[#allocation2] sm:$0x1] }
  0x77   : > { %v277_v32 = vsel %vm272_vm1, %v276_v30, 0.0  ;;  %v273_v33 = vsel %vm272_vm1, %v271_v31, 0.0 }
  0x78   : > { %278 = vadd.xlane.f32.xlu0 %v277_v32 }
  0x7c   : > { %274 = vadd.xlane.f32.xlu0 %v273_v33 }
 0x105   : > { %v279_v34 = vpop.xlane.xlu0 %278 }
 0x106   : > { %v282_v35 = vadd.f32 1.0, %v279_v34 }
 0x108   : > { %513 = vrcp.f32 %v282_v35 }
 0x109   : > { %v275_v36 = vpop.xlane.xlu0 %274 }
 0x10a   : > { %v280_v37 = vadd.f32 1.0, %v275_v36 }
 0x10c   : > { %v281_v38 = vmul.f32 2.0, %v280_v37 }
 0x112   : > { %v514_v39 = vpop.eup %513 }
 0x113   : > { %v284_v40 = vmul.f32 %v514_v39, %v281_v38 }
 0x115   : > { %285 = vst [vmem:[%s229_s7] sm:$0x1] %v284_v40 }
 0x116   : > { %588 = shalt.err (!%p585_p2)
}
 0x117   : > { %s589_s22 = scalar_lea.hbm %s890_s4, 16  ;;  %s593_s18 = scalar_lea.hbm %s946_s2, 128 }
 0x118   : > { %p590_p9 = scmp.ne.s32.totalorder %s890_s4, %s589_s22  ;;  %p594_p6 = scmp.lt.u32.totalorder %s890_s4, %s946_s2 }
 0x119   : > { %p595_p13 = scmp.lt.u32.totalorder %s593_s18, %s589_s22  ;;  %p597_p8 = scmp.lt.u32.totalorder %s589_s22, %s890_s4 }
 0x11a   : > { %p591_p12 = pnand %p590_p9, %p961_p0 }
 0x11b   : > { %p596_p5 = por %p595_p13, %p594_p6 }
 0x11c   : > { %p592_p4 = pneg %p591_p12 }
 0x11d   : > { %p598_p7 = por %p597_p8, %p596_p5 }
 0x11f   : > { %p599_p3 = pnand %p598_p7, %p592_p4 }
 0x121   : > { %602 = shalt.err (!%p599_p3)
}
 0x122   : > { %433 = dma.vmem_to_hbm [thread:$0]  (%p961_p0), %s892_s6, 16, %s890_s4, %s287_s13  }
 0x123 PF: > { %p447_p10 = scmp.ge.s32.totalorder %s677_s16, 2  ;;  %s313_s17 = sand.u32 1, %s649_s9  }
 0x124   : > { %p962_p11 = scmp.ne.s32.totalorder %s953_s28, 0  ;;  %s314_s7 = scalar_lea.sflag [#allocation6], %s313_s17 }
 0x126   : > { %p443_p1 = pnand %p447_p10, %p962_p11 }
 0x128   : > { %644 = dma.done.wait (!%p443_p1), %s314_s7, 16  }
 0x129   : > { %646 = vsyncadd (!%p443_p1), %s314_s7, 4294967280  ;;  %s21_s16 = sadd.s32 1, %s677_s16   ;;  %s963_s9 = smov %s653_s10 }
 0x12a   : > { %p18_p2 = scmp.ge.s32.totalorder %s21_s16, 10   ;;  %s964_s10 = smov %s657_s11 }
 0x12b   : > { %s965_s11 = smov %s778_s30  ;;  %s966_s12 = smov %s669_s14 }
 0x12c   : > { %s967_s13 = smov %s673_s15  ;;  %s968_s14 = smov %s971_s19 }
 0x12d   : > { %s969_s15 = smov %s975_s20  ;;  %20 = sbr.rel (!%p18_p2) target bundleno = 9 (0x9), region = 94 }
 0x134   :  { %318 = vsyncpa [#allocation5], 1 }
 0x135   :  { %320 = vsyncpa [#allocation5 + $0x1], 1 }
 0x136   :  { %321 = vsyncpa [#allocation8], 1 }
 0x137   :  { %323 = vsyncpa [#allocation8 + $0x1], 1 }
 0x138   :  { %324 = vsyncpa [#allocation6], 1 }
 0x139   :  { %326 = vsyncpa [#allocation6 + $0x1], 1 }

</bundles_post_ra>
